<compile_context>
chip_gen: v5e
topology: v5e:2x2
jax: 0.10.0
libtpu: 0.0.40
codegen_flags: <defaults>
</compile_context>

<pallas_src>
import functools

import jax
import jax.numpy as jnp
from jax.experimental import pallas as pl
from jax.experimental.pallas import tpu as pltpu

# Logical sizes from the PyTorch module.
IN_F = 3
HID_F = 6
OUT_F = 1

LANE = 128       # lane width (batch is laid out along lanes)
MAX_TR = 512     # rows-of-128 per grid step -> up to 65536 batch elems / tile


def _mlp_kernel(p_ref, x_ref, o_ref):
    """p_ref: SMEM f32[31] = [w1 (3*6, row-major in,out) | b1 (6) | w2 (6) | b2 (1)].
    x_ref: VMEM (3, TR, 128) -- x transposed, batch on (sublane, lane).
    o_ref: VMEM (1, TR, 128)."""
    x0 = x_ref[0]          # (TR, 128)
    x1 = x_ref[1]
    x2 = x_ref[2]
    # fc2 accumulator starts at b2 (final ReLU applied after the sum).
    acc = jnp.full(x0.shape, p_ref[5 * HID_F], dtype=jnp.float32)
    for j in range(HID_F):                                   # unrolled, 6 chains
        h = (p_ref[0 * HID_F + j] * x0
             + p_ref[1 * HID_F + j] * x1
             + p_ref[2 * HID_F + j] * x2
             + p_ref[3 * HID_F + j])                         # + b1[j]
        acc = acc + p_ref[4 * HID_F + j] * jnp.maximum(h, 0.0)   # w2[j]*relu(h)
    o_ref[0] = jnp.maximum(acc, 0.0)


def pack_params(w1, b1, w2, b2):
    """Pack all weights/biases into one f32[31] SMEM-friendly vector.
    Call once and reuse (hoisted out of the per-forward path)."""
    return jnp.concatenate([
        jnp.asarray(w1, jnp.float32).reshape(-1),   # (3,6) row-major: w1[i,j] at i*6+j
        jnp.asarray(b1, jnp.float32).reshape(-1),   # 18..23
        jnp.asarray(w2, jnp.float32).reshape(-1),   # (6,1): w2[j] at 24+j
        jnp.asarray(b2, jnp.float32).reshape(-1),   # 30
    ])


@functools.partial(jax.jit, static_argnames=())
def flappy_forward(x, packed_params):
    """x: (B, 3) f32, packed_params: f32[31] from pack_params.
    Returns (B, 1) f32 = relu(relu(x @ w1 + b1) @ w2 + b2)."""
    B = x.shape[0]
    r_min = max(1, pl.cdiv(B, LANE))              # rows of 128 needed
    TR = min(MAX_TR, pl.cdiv(r_min, 8) * 8)       # tile rows, multiple of 8
    R = pl.cdiv(r_min, TR) * TR                   # total rows, multiple of TR
    Bp = R * LANE

    # Batch on lanes: (B,3) -> (3,B) -> zero-pad tail -> (3, R, 128).
    xt = jnp.transpose(x.astype(jnp.float32))
    xt = jnp.pad(xt, ((0, 0), (0, Bp - B))).reshape(IN_F, R, LANE)

    out = pl.pallas_call(
        _mlp_kernel,
        out_shape=jax.ShapeDtypeStruct((OUT_F, R, LANE), jnp.float32),
        grid=(R // TR,),
        in_specs=[
            # 31 scalars, whole array resident in SMEM.
            pl.BlockSpec(memory_space=pltpu.MemorySpace.SMEM),
            pl.BlockSpec((IN_F, TR, LANE), lambda i: (0, i, 0)),
        ],
        out_specs=pl.BlockSpec((OUT_F, TR, LANE), lambda i: (0, i, 0)),
        compiler_params=pltpu.CompilerParams(
            dimension_semantics=("parallel",)),   # megacore sharding on v7x
    )(packed_params, xt)

    # (1, R, 128) -> (Bp,) -> (B, 1).  Padded batch entries are discarded here.
    return out.reshape(-1)[:B][:, None]


def init_params(key):
    """Deterministic init mimicking torch.nn.Linear defaults:
    U(-1/sqrt(fan_in), 1/sqrt(fan_in)).  Weights stored as (in, out)."""
    k1, k2, k3, k4 = jax.random.split(key, 4)
    bound1 = 1.0 / (IN_F ** 0.5)
    bound2 = 1.0 / (HID_F ** 0.5)
    w1 = jax.random.uniform(k1, (IN_F, HID_F), jnp.float32, -bound1, bound1)
    b1 = jax.random.uniform(k2, (HID_F,), jnp.float32, -bound1, bound1)
    w2 = jax.random.uniform(k3, (HID_F, OUT_F), jnp.float32, -bound2, bound2)
    b2 = jax.random.uniform(k4, (OUT_F,), jnp.float32, -bound2, bound2)
    return w1, b1, w2, b2


if __name__ == "__main__":
    key = jax.random.PRNGKey(0)
    kp, kx = jax.random.split(key)
    w1, b1, w2, b2 = init_params(kp)
    params = pack_params(w1, b1, w2, b2)   # packed once, reused per forward

    batch = 4
    x = jax.random.normal(kx, (batch, IN_F), jnp.float32)

    y = flappy_forward(x, params)
    y = jax.block_until_ready(y)

    # Reference in plain JAX for a sanity check.
    ref = jnp.maximum(jnp.maximum(x @ w1 + b1, 0.0) @ w2 + b2, 0.0)
    assert y.shape == (batch, OUT_F)
    assert jnp.allclose(y, ref, atol=1e-5, rtol=1e-5)

    print("KERNEL_OK")
</pallas_src>

<mosaic_0001>
module attributes {stable_mosaic.version = 11 : i64} {
  func.func @_mlp_kernel(%arg0: i32, %arg1: memref<31xf32, #tpu.memory_space<smem>>, %arg2: memref<3x8x128xf32, #tpu.memory_space<vmem>>, %arg3: memref<1x8x128xf32, #tpu.memory_space<vmem>>) attributes {dimension_semantics = [#tpu.dimension_semantics<parallel>], iteration_bounds = array<i64: 1>, scalar_prefetch = 0 : i64, scratch_operands = 0 : i64, tpu.core_type = #tpu.core_type<tc>, window_params = [{transform_indices = @transform_0, window_bounds = array<i64: 31>}, {transform_indices = @transform_1, window_bounds = array<i64: 3, 8, 128>}, {transform_indices = @transform_2, window_bounds = array<i64: 1, 8, 128>}]} {
    %c0 = arith.constant 0 : index
    %c0_0 = arith.constant 0 : index
    %c0_1 = arith.constant 0 : index
    %0 = vector.load %arg2[%c0, %c0_0, %c0_1] : memref<3x8x128xf32, #tpu.memory_space<vmem>>, vector<1x8x128xf32>
    %1 = vector.shape_cast %0 : vector<1x8x128xf32> to vector<8x128xf32>
    %c1 = arith.constant 1 : index
    %c0_2 = arith.constant 0 : index
    %c0_3 = arith.constant 0 : index
    %2 = vector.load %arg2[%c1, %c0_2, %c0_3] : memref<3x8x128xf32, #tpu.memory_space<vmem>>, vector<1x8x128xf32>
    %3 = vector.shape_cast %2 : vector<1x8x128xf32> to vector<8x128xf32>
    %c2 = arith.constant 2 : index
    %c0_4 = arith.constant 0 : index
    %c0_5 = arith.constant 0 : index
    %4 = vector.load %arg2[%c2, %c0_4, %c0_5] : memref<3x8x128xf32, #tpu.memory_space<vmem>>, vector<1x8x128xf32>
    %5 = vector.shape_cast %4 : vector<1x8x128xf32> to vector<8x128xf32>
    %c30 = arith.constant 30 : index
    %6 = memref.load %arg1[%c30] : memref<31xf32, #tpu.memory_space<smem>>
    %7 = vector.broadcast %6 : f32 to vector<8x128xf32>
    %c0_6 = arith.constant 0 : index
    %8 = memref.load %arg1[%c0_6] : memref<31xf32, #tpu.memory_space<smem>>
    %9 = vector.broadcast %8 : f32 to vector<8x128xf32>
    %10 = arith.mulf %9, %1 : vector<8x128xf32>
    %c6 = arith.constant 6 : index
    %11 = memref.load %arg1[%c6] : memref<31xf32, #tpu.memory_space<smem>>
    %12 = vector.broadcast %11 : f32 to vector<8x128xf32>
    %13 = arith.mulf %12, %3 : vector<8x128xf32>
    %14 = arith.addf %10, %13 : vector<8x128xf32>
    %c12 = arith.constant 12 : index
    %15 = memref.load %arg1[%c12] : memref<31xf32, #tpu.memory_space<smem>>
    %16 = vector.broadcast %15 : f32 to vector<8x128xf32>
    %17 = arith.mulf %16, %5 : vector<8x128xf32>
    %18 = arith.addf %14, %17 : vector<8x128xf32>
    %c18 = arith.constant 18 : index
    %19 = memref.load %arg1[%c18] : memref<31xf32, #tpu.memory_space<smem>>
    %20 = vector.broadcast %19 : f32 to vector<8x128xf32>
    %21 = arith.addf %18, %20 : vector<8x128xf32>
    %c24 = arith.constant 24 : index
    %22 = memref.load %arg1[%c24] : memref<31xf32, #tpu.memory_space<smem>>
    %cst = arith.constant 0.000000e+00 : f32
    %23 = vector.broadcast %cst : f32 to vector<8x128xf32>
    %24 = arith.maximumf %21, %23 : vector<8x128xf32>
    %25 = vector.broadcast %22 : f32 to vector<8x128xf32>
    %26 = arith.mulf %25, %24 : vector<8x128xf32>
    %27 = arith.addf %7, %26 : vector<8x128xf32>
    %c1_7 = arith.constant 1 : index
    %28 = memref.load %arg1[%c1_7] : memref<31xf32, #tpu.memory_space<smem>>
    %29 = vector.broadcast %28 : f32 to vector<8x128xf32>
    %30 = arith.mulf %29, %1 : vector<8x128xf32>
    %c7 = arith.constant 7 : index
    %31 = memref.load %arg1[%c7] : memref<31xf32, #tpu.memory_space<smem>>
    %32 = vector.broadcast %31 : f32 to vector<8x128xf32>
    %33 = arith.mulf %32, %3 : vector<8x128xf32>
    %34 = arith.addf %30, %33 : vector<8x128xf32>
    %c13 = arith.constant 13 : index
    %35 = memref.load %arg1[%c13] : memref<31xf32, #tpu.memory_space<smem>>
    %36 = vector.broadcast %35 : f32 to vector<8x128xf32>
    %37 = arith.mulf %36, %5 : vector<8x128xf32>
    %38 = arith.addf %34, %37 : vector<8x128xf32>
    %c19 = arith.constant 19 : index
    %39 = memref.load %arg1[%c19] : memref<31xf32, #tpu.memory_space<smem>>
    %40 = vector.broadcast %39 : f32 to vector<8x128xf32>
    %41 = arith.addf %38, %40 : vector<8x128xf32>
    %c25 = arith.constant 25 : index
    %42 = memref.load %arg1[%c25] : memref<31xf32, #tpu.memory_space<smem>>
    %cst_8 = arith.constant 0.000000e+00 : f32
    %43 = vector.broadcast %cst_8 : f32 to vector<8x128xf32>
    %44 = arith.maximumf %41, %43 : vector<8x128xf32>
    %45 = vector.broadcast %42 : f32 to vector<8x128xf32>
    %46 = arith.mulf %45, %44 : vector<8x128xf32>
    %47 = arith.addf %27, %46 : vector<8x128xf32>
    %c2_9 = arith.constant 2 : index
    %48 = memref.load %arg1[%c2_9] : memref<31xf32, #tpu.memory_space<smem>>
    %49 = vector.broadcast %48 : f32 to vector<8x128xf32>
    %50 = arith.mulf %49, %1 : vector<8x128xf32>
    %c8 = arith.constant 8 : index
    %51 = memref.load %arg1[%c8] : memref<31xf32, #tpu.memory_space<smem>>
    %52 = vector.broadcast %51 : f32 to vector<8x128xf32>
    %53 = arith.mulf %52, %3 : vector<8x128xf32>
    %54 = arith.addf %50, %53 : vector<8x128xf32>
    %c14 = arith.constant 14 : index
    %55 = memref.load %arg1[%c14] : memref<31xf32, #tpu.memory_space<smem>>
    %56 = vector.broadcast %55 : f32 to vector<8x128xf32>
    %57 = arith.mulf %56, %5 : vector<8x128xf32>
    %58 = arith.addf %54, %57 : vector<8x128xf32>
    %c20 = arith.constant 20 : index
    %59 = memref.load %arg1[%c20] : memref<31xf32, #tpu.memory_space<smem>>
    %60 = vector.broadcast %59 : f32 to vector<8x128xf32>
    %61 = arith.addf %58, %60 : vector<8x128xf32>
    %c26 = arith.constant 26 : index
    %62 = memref.load %arg1[%c26] : memref<31xf32, #tpu.memory_space<smem>>
    %cst_10 = arith.constant 0.000000e+00 : f32
    %63 = vector.broadcast %cst_10 : f32 to vector<8x128xf32>
    %64 = arith.maximumf %61, %63 : vector<8x128xf32>
    %65 = vector.broadcast %62 : f32 to vector<8x128xf32>
    %66 = arith.mulf %65, %64 : vector<8x128xf32>
    %67 = arith.addf %47, %66 : vector<8x128xf32>
    %c3 = arith.constant 3 : index
    %68 = memref.load %arg1[%c3] : memref<31xf32, #tpu.memory_space<smem>>
    %69 = vector.broadcast %68 : f32 to vector<8x128xf32>
    %70 = arith.mulf %69, %1 : vector<8x128xf32>
    %c9 = arith.constant 9 : index
    %71 = memref.load %arg1[%c9] : memref<31xf32, #tpu.memory_space<smem>>
    %72 = vector.broadcast %71 : f32 to vector<8x128xf32>
    %73 = arith.mulf %72, %3 : vector<8x128xf32>
    %74 = arith.addf %70, %73 : vector<8x128xf32>
    %c15 = arith.constant 15 : index
    %75 = memref.load %arg1[%c15] : memref<31xf32, #tpu.memory_space<smem>>
    %76 = vector.broadcast %75 : f32 to vector<8x128xf32>
    %77 = arith.mulf %76, %5 : vector<8x128xf32>
    %78 = arith.addf %74, %77 : vector<8x128xf32>
    %c21 = arith.constant 21 : index
    %79 = memref.load %arg1[%c21] : memref<31xf32, #tpu.memory_space<smem>>
    %80 = vector.broadcast %79 : f32 to vector<8x128xf32>
    %81 = arith.addf %78, %80 : vector<8x128xf32>
    %c27 = arith.constant 27 : index
    %82 = memref.load %arg1[%c27] : memref<31xf32, #tpu.memory_space<smem>>
    %cst_11 = arith.constant 0.000000e+00 : f32
    %83 = vector.broadcast %cst_11 : f32 to vector<8x128xf32>
    %84 = arith.maximumf %81, %83 : vector<8x128xf32>
    %85 = vector.broadcast %82 : f32 to vector<8x128xf32>
    %86 = arith.mulf %85, %84 : vector<8x128xf32>
    %87 = arith.addf %67, %86 : vector<8x128xf32>
    %c4 = arith.constant 4 : index
    %88 = memref.load %arg1[%c4] : memref<31xf32, #tpu.memory_space<smem>>
    %89 = vector.broadcast %88 : f32 to vector<8x128xf32>
    %90 = arith.mulf %89, %1 : vector<8x128xf32>
    %c10 = arith.constant 10 : index
    %91 = memref.load %arg1[%c10] : memref<31xf32, #tpu.memory_space<smem>>
    %92 = vector.broadcast %91 : f32 to vector<8x128xf32>
    %93 = arith.mulf %92, %3 : vector<8x128xf32>
    %94 = arith.addf %90, %93 : vector<8x128xf32>
    %c16 = arith.constant 16 : index
    %95 = memref.load %arg1[%c16] : memref<31xf32, #tpu.memory_space<smem>>
    %96 = vector.broadcast %95 : f32 to vector<8x128xf32>
    %97 = arith.mulf %96, %5 : vector<8x128xf32>
    %98 = arith.addf %94, %97 : vector<8x128xf32>
    %c22 = arith.constant 22 : index
    %99 = memref.load %arg1[%c22] : memref<31xf32, #tpu.memory_space<smem>>
    %100 = vector.broadcast %99 : f32 to vector<8x128xf32>
    %101 = arith.addf %98, %100 : vector<8x128xf32>
    %c28 = arith.constant 28 : index
    %102 = memref.load %arg1[%c28] : memref<31xf32, #tpu.memory_space<smem>>
    %cst_12 = arith.constant 0.000000e+00 : f32
    %103 = vector.broadcast %cst_12 : f32 to vector<8x128xf32>
    %104 = arith.maximumf %101, %103 : vector<8x128xf32>
    %105 = vector.broadcast %102 : f32 to vector<8x128xf32>
    %106 = arith.mulf %105, %104 : vector<8x128xf32>
    %107 = arith.addf %87, %106 : vector<8x128xf32>
    %c5 = arith.constant 5 : index
    %108 = memref.load %arg1[%c5] : memref<31xf32, #tpu.memory_space<smem>>
    %109 = vector.broadcast %108 : f32 to vector<8x128xf32>
    %110 = arith.mulf %109, %1 : vector<8x128xf32>
    %c11 = arith.constant 11 : index
    %111 = memref.load %arg1[%c11] : memref<31xf32, #tpu.memory_space<smem>>
    %112 = vector.broadcast %111 : f32 to vector<8x128xf32>
    %113 = arith.mulf %112, %3 : vector<8x128xf32>
    %114 = arith.addf %110, %113 : vector<8x128xf32>
    %c17 = arith.constant 17 : index
    %115 = memref.load %arg1[%c17] : memref<31xf32, #tpu.memory_space<smem>>
    %116 = vector.broadcast %115 : f32 to vector<8x128xf32>
    %117 = arith.mulf %116, %5 : vector<8x128xf32>
    %118 = arith.addf %114, %117 : vector<8x128xf32>
    %c23 = arith.constant 23 : index
    %119 = memref.load %arg1[%c23] : memref<31xf32, #tpu.memory_space<smem>>
    %120 = vector.broadcast %119 : f32 to vector<8x128xf32>
    %121 = arith.addf %118, %120 : vector<8x128xf32>
    %c29 = arith.constant 29 : index
    %122 = memref.load %arg1[%c29] : memref<31xf32, #tpu.memory_space<smem>>
    %cst_13 = arith.constant 0.000000e+00 : f32
    %123 = vector.broadcast %cst_13 : f32 to vector<8x128xf32>
    %124 = arith.maximumf %121, %123 : vector<8x128xf32>
    %125 = vector.broadcast %122 : f32 to vector<8x128xf32>
    %126 = arith.mulf %125, %124 : vector<8x128xf32>
    %127 = arith.addf %107, %126 : vector<8x128xf32>
    %cst_14 = arith.constant 0.000000e+00 : f32
    %128 = vector.broadcast %cst_14 : f32 to vector<8x128xf32>
    %129 = arith.maximumf %127, %128 : vector<8x128xf32>
    %c0_15 = arith.constant 0 : index
    %c0_16 = arith.constant 0 : index
    %c0_17 = arith.constant 0 : index
    %130 = vector.load %arg3[%c0_15, %c0_16, %c0_17] : memref<1x8x128xf32, #tpu.memory_space<vmem>>, vector<1x8x128xf32>
    %131 = vector.shape_cast %130 : vector<1x8x128xf32> to vector<8x128xf32>
    %132 = vector.shape_cast %129 : vector<8x128xf32> to vector<1x8x128xf32>
    tpu.vector_store %arg3[%c0_15, %c0_16, %c0_17], %132 {strides = array<i32>} : memref<1x8x128xf32, #tpu.memory_space<vmem>>, vector<1x8x128xf32>,
    return
  }
  func.func @transform_0(%arg0: i32) -> i32 {
    %c0_i32 = arith.constant 0 : i32
    %c0_i32_0 = arith.constant 0 : i32
    return %c0_i32 : i32
  }
  func.func @transform_1(%arg0: i32) -> (i32, i32, i32) {
    %c0_i32 = arith.constant 0 : i32
    %c0_i32_0 = arith.constant 0 : i32
    %c0_i32_1 = arith.constant 0 : i32
    return %c0_i32, %arg0, %c0_i32_0 : i32, i32, i32
  }
  func.func @transform_2(%arg0: i32) -> (i32, i32, i32) {
    %c0_i32 = arith.constant 0 : i32
    %c0_i32_0 = arith.constant 0 : i32
    %c0_i32_1 = arith.constant 0 : i32
    return %c0_i32, %arg0, %c0_i32_0 : i32, i32, i32
  }
}

</mosaic_0001>

<bundles_post_ra>
// kernel: flappy_forward.1
= control target key start
LH: loop header
LB: loop body
LE: loop exit
PB: predicated region body
PF: predicated region fallthrough
CT: control target
= control target key end

     0   :  { %7 = vsyncpa [#allocation3], 0  ;;  %s199_s12 = smov [#allocation2]   ;;  %s284_s0 = inlined_call_operand.vmem [shape: f32[31], index: 0, kind: input, shape index: {}]   ;;  %s285_s1 = inlined_call_operand.vmem [shape: f32[3,8,128], index: 1, kind: input, shape index: {}]   ;;  %s286_s2 = inlined_call_operand.vmem [shape: f32[1,8,128], index: 2, kind: output, shape index: {}]  }
   0x1   :  { %s13_s11 = sshll.u32 %s284_s0, 4  ;;  %s14_s11 = int_to_ptr.vmem [resolvable:$true] %s13_s11 }
   0x2   :  { %16 = dma.vmem_to_smem %s14_s11, 16, %s199_s12, [#allocation3]  }
   0x3   :  { %197 = dma.done.wait [#allocation3], 16  }
   0x4   :  { %198 = vsyncadd [#allocation3], 4294967280 }
   0x5   :  { %23 = sfence }
   0x6   :  { %s218_s13 = sld [smem:[#allocation2 + $0x1e]]  ;;  %v223_v0 = vld [vmem:[%s285_s1] sm:$0xff]  ;;  %v230_v1 = vld [vmem:[%s285_s1 + $0x8] sm:$0xff]  ;;  %v235_v2 = vld [vmem:[%s285_s1 + $0x10] sm:$0xff] }
   0x7   :  { %s31_s14 = sld [smem:[#allocation2]] }
   0x8   :  { %s155_s15 = sld [smem:[#allocation2 + $0x6]] }
   0x9   :  { %s156_s16 = sld [smem:[#allocation2 + $0xc]] }
   0xa   :  { %s157_s17 = sld [smem:[#allocation2 + $0x12]] }
   0xb   :  { %s225_s20 = sld [smem:[#allocation2 + $0x18]] }
   0xc   :  { %s159_s22 = sld [smem:[#allocation2 + $0x1]]  ;;  %v30_v31 = vstv %s218_s13 }
   0xd   :  { %v32_v3 = vstv %s31_s14  ;;  %s160_s25 = sld [smem:[#allocation2 + $0x7]] }
   0xe   :  { %v33_v4 = vmul.f32 %v32_v3, %v223_v0  ;;  %v35_v5 = vstv %s155_s15  ;;  %s161_s26 = sld [smem:[#allocation2 + $0xd]] }
   0xf   :  { %v36_v6 = vmul.f32 %v230_v1, %v35_v5  ;;  %v39_v7 = vstv %s156_s16  ;;  %s239_s27 = sld [smem:[#allocation2 + $0x13]] }
  0x10   :  { %v40_v8 = vmul.f32 %v235_v2, %v39_v7  ;;  %s242_s28 = sld [smem:[#allocation2 + $0x19]]  ;;  %v43_v10 = vstv %s157_s17 }
  0x11   :  { %v37_v9 = vadd.f32 %v36_v6, %v33_v4  ;;  %s164_s29 = sld [smem:[#allocation2 + $0x2]]  ;;  %v47_v26 = vstv %s225_s20 }
  0x12   :  { %v51_v11 = vstv %s159_s22  ;;  %s165_s1 = sld [smem:[#allocation2 + $0x8]] }
  0x13   :  { %v41_v12 = vadd.f32 %v40_v8, %v37_v9  ;;  %v52_v13 = vmul.f32 %v51_v11, %v223_v0  ;;  %v54_v14 = vstv %s160_s25  ;;  %s166_s30 = sld [smem:[#allocation2 + $0xe]] }
  0x14   :  { %v55_v15 = vmul.f32 %v230_v1, %v54_v14  ;;  %v58_v16 = vstv %s161_s26  ;;  %s246_s3 = sld [smem:[#allocation2 + $0x14]] }
  0x15   :  { %v44_v17 = vadd.f32 %v43_v10, %v41_v12  ;;  %v59_v18 = vmul.f32 %v235_v2, %v58_v16  ;;  %s249_s4 = sld [smem:[#allocation2 + $0x1a]]  ;;  %v62_v20 = vstv %s239_s27 }
  0x16   :  { %v56_v19 = vadd.f32 %v55_v15, %v52_v13  ;;  %s169_s5 = sld [smem:[#allocation2 + $0x3]]  ;;  %v66_v37 = vstv %s242_s28 }
  0x17   :  { %v70_v21 = vstv %s164_s29  ;;  %s170_s6 = sld [smem:[#allocation2 + $0x9]]  ;;  %v46_v22 = vmax.f32 %v44_v17, 0.0 }
  0x18   :  { %v60_v23 = vadd.f32 %v59_v18, %v56_v19  ;;  %v71_v24 = vmul.f32 %v70_v21, %v223_v0  ;;  %v73_v25 = vstv %s165_s1  ;;  %s171_s7 = sld [smem:[#allocation2 + $0xf]] }
  0x19   :  { %v74_v27 = vmul.f32 %v230_v1, %v73_v25  ;;  %v77_v28 = vstv %s166_s30  ;;  %s255_s8 = sld [smem:[#allocation2 + $0x15]]  ;;  %v48_v33 = vmul.f32 %v47_v26, %v46_v22 }
  0x1a   :  { %v63_v29 = vadd.f32 %v62_v20, %v60_v23  ;;  %v78_v30 = vmul.f32 %v235_v2, %v77_v28  ;;  %s258_s9 = sld [smem:[#allocation2 + $0x1b]]  ;;  %v81_v35 = vstv %s246_s3 }
  0x1b   :  { %v75_v32 = vadd.f32 %v74_v27, %v71_v24  ;;  %s174_s10 = sld [smem:[#allocation2 + $0x4]]  ;;  %v49_v45 = vadd.f32 %v48_v33, %v30_v31  ;;  %v85_v49 = vstv %s249_s4 }
  0x1c   :  { %v65_v34 = vmax.f32 %v63_v29, 0.0  ;;  %v89_v36 = vstv %s169_s5  ;;  %s175_s11 = sld [smem:[#allocation2 + $0xa]] }
  0x1d   :  { %v79_v38 = vadd.f32 %v78_v30, %v75_v32  ;;  %v90_v39 = vmul.f32 %v89_v36, %v223_v0  ;;  %v92_v40 = vstv %s170_s6  ;;  %s176_s12 = sld [smem:[#allocation2 + $0x10]] }
  0x1e   :  { %v93_v41 = vmul.f32 %v230_v1, %v92_v40  ;;  %v96_v42 = vstv %s171_s7  ;;  %s265_s14 = sld [smem:[#allocation2 + $0x16]]  ;;  %v67_v46 = vmul.f32 %v66_v37, %v65_v34 }
  0x1f   :  { %v82_v43 = vadd.f32 %v81_v35, %v79_v38  ;;  %v97_v44 = vmul.f32 %v235_v2, %v96_v42  ;;  %s268_s13 = sld [smem:[#allocation2 + $0x1c]]  ;;  %v100_v50 = vstv %s255_s8 }
  0x20   :  { %v94_v47 = vadd.f32 %v93_v41, %v90_v39  ;;  %s179_s15 = sld [smem:[#allocation2 + $0x5]]  ;;  %v68_v57 = vadd.f32 %v67_v46, %v49_v45  ;;  %v104_v61 = vstv %s258_s9 }
  0x21   :  { %v84_v48 = vmax.f32 %v82_v43, 0.0  ;;  %v108_v51 = vstv %s174_s10  ;;  %s180_s16 = sld [smem:[#allocation2 + $0xb]] }
  0x22   :  { %v98_v52 = vadd.f32 %v97_v44, %v94_v47  ;;  %v109_v53 = vmul.f32 %v108_v51, %v223_v0  ;;  %v111_v54 = vstv %s175_s11  ;;  %s181_s17 = sld [smem:[#allocation2 + $0x11]] }
  0x23   :  { %v112_v55 = vmul.f32 %v230_v1, %v111_v54  ;;  %v115_v56 = vstv %s176_s12  ;;  %s182_s18 = sld [smem:[#allocation2 + $0x17]]  ;;  %v86_v58 = vmul.f32 %v85_v49, %v84_v48 }
  0x24   :  { %v101_v59 = vadd.f32 %v100_v50, %v98_v52  ;;  %v116_v60 = vmul.f32 %v235_v2, %v115_v56  ;;  %v119_v3 = vstv %s265_s14  ;;  %s183_s19 = sld [smem:[#allocation2 + $0x1d]] }
  0x25   :  { %v113_v62 = vadd.f32 %v112_v55, %v109_v53  ;;  %v87_v8 = vadd.f32 %v86_v58, %v68_v57  ;;  %v123_v14 = vstv %s268_s13 }
  0x26   :  { %v103_v63 = vmax.f32 %v101_v59, 0.0  ;;  %v127_v4 = vstv %s179_s15 }
  0x27   :  { %v117_v5 = vadd.f32 %v116_v60, %v113_v62  ;;  %v128_v6 = vmul.f32 %v127_v4, %v223_v0  ;;  %v130_v7 = vstv %s180_s16 }
  0x28   :  { %v105_v9 = vmul.f32 %v104_v61, %v103_v63  ;;  %v131_v10 = vmul.f32 %v230_v1, %v130_v7  ;;  %v134_v11 = vstv %s181_s17 }
  0x29   :  { %v120_v12 = vadd.f32 %v119_v3, %v117_v5  ;;  %v135_v13 = vmul.f32 %v235_v2, %v134_v11  ;;  %v138_v17 = vstv %s182_s18 }
  0x2a   :  { %v132_v15 = vadd.f32 %v131_v10, %v128_v6  ;;  %v106_v18 = vadd.f32 %v105_v9, %v87_v8  ;;  %v142_v22 = vstv %s183_s19 }
  0x2b   :  { %v122_v16 = vmax.f32 %v120_v12, 0.0 }
  0x2c   :  { %v136_v19 = vadd.f32 %v135_v13, %v132_v15 }
  0x2d   :  { %v124_v20 = vmul.f32 %v123_v14, %v122_v16 }
  0x2e   :  { %v139_v21 = vadd.f32 %v138_v17, %v136_v19 }
  0x2f   :  { %v125_v0 = vadd.f32 %v124_v20, %v106_v18 }
  0x30   :  { %v141_v23 = vmax.f32 %v139_v21, 0.0 }
  0x32   :  { %v143_v24 = vmul.f32 %v142_v22, %v141_v23 }
  0x34   :  { %v144_v25 = vadd.f32 %v143_v24, %v125_v0 }
  0x36   :  { %v145_v26 = vmax.f32 %v144_v25, 0.0 }
  0x38   :  { %146 = vst [vmem:[%s286_s2] sm:$0xff] %v145_v26 }
  0x39   :  { %151 = vsyncpa [#allocation3], 1 }

</bundles_post_ra>
